<compile_context>
chip_gen: v7x
topology: tpu7x:2x2x1
jax: 0.10.0
libtpu: 0.0.40
codegen_flags: <defaults>
</compile_context>

<pallas_src>
import functools

import jax
import jax.numpy as jnp
from jax.experimental import pallas as pl
from jax.experimental.pallas import tpu as pltpu


def _model_with_loss_kernel(x_ref, w1t_ref, b1_ref, w2t_ref, b2_ref, tgt_ref,
                            hm_ref, ploss_ref):
    # x_ref block: (1, Cin, T) -> (Cin, T); channels on sublanes, pixels on lanes.
    x = x_ref[0].astype(jnp.float32)                        # (Cin, T)
    w1t = w1t_ref[...].astype(jnp.float32)                  # (Chid, Cin)
    cin = w1t.shape[1]

    # Layer 1 (1x1 conv): tiny K=Cin contraction -> unrolled broadcast-FMAs on the VPU
    # instead of an MXU pass that would be >95% idle.
    h = b1_ref[...].astype(jnp.float32)                     # (Chid, 1) broadcasts over lanes
    for k in range(cin):                                    # static unroll
        h = h + w1t[:, k:k + 1] * x[k:k + 1, :]             # (Chid, T)
    h = jnp.maximum(h, 0.0)

    # Layer 2 (1x1 conv): (Cout, Chid) @ (Chid, T) on the MXU, lane-dense N = T.
    logits = jnp.dot(w2t_ref[...].astype(jnp.float32), h,
                     preferred_element_type=jnp.float32) + b2_ref[...]  # (Cout, T)

    # outputs[-1]['hm'] — lane-dense full-width store.
    hm_ref[0] = logits.astype(hm_ref.dtype)

    # processor: sigmoid (logic_axis), fused into the loss hot path.
    probs = jax.nn.sigmoid(logits)
    diff = probs - tgt_ref[0].astype(jnp.float32)

    # loss: per-tile partial sum of squared error (normalized to a mean in the wrapper).
    # Written to this step's own output block -> no cross-step accumulator -> fully parallel.
    ploss_ref[0, 0] = jnp.sum(diff * diff, keepdims=True)


@functools.partial(jax.jit, static_argnames=("tile_hw",))
def _forward_pallas(x_nchw, hm_target_nchw, w1, b1, w2, b2, tile_hw=2048):
    B, Cin, H, W = x_nchw.shape
    Chid = w1.shape[1]
    Cout = w2.shape[1]
    HW = H * W

    # Pick a lane-dense pixel tile; cap at the full spatial extent.
    tile = min(tile_hw, HW)
    assert HW % tile == 0, f"H*W={HW} must be divisible by tile_hw={tile}"
    n_hw = HW // tile

    # Glue: pure reshapes (no transposes) — NCHW-native channels-on-sublanes layout.
    x3 = x_nchw.reshape(B, Cin, HW)
    t3 = hm_target_nchw.reshape(B, Cout, HW)
    # Tiny weight reorients so the kernel computes W^T @ X.
    w1t = jnp.transpose(w1)            # (Chid, Cin)
    w2t = jnp.transpose(w2)            # (Cout, Chid)
    b1c = b1.reshape(Chid, 1)
    b2c = b2.reshape(Cout, 1)

    hm3, ploss = pl.pallas_call(
        _model_with_loss_kernel,
        out_shape=(
            jax.ShapeDtypeStruct((B, Cout, HW), jnp.float32),        # hm logits (NCHW order)
            jax.ShapeDtypeStruct((B, n_hw, 1, 1), jnp.float32),      # per-tile loss partials
        ),
        grid_spec=pltpu.PrefetchScalarGridSpec(
            num_scalar_prefetch=0,
            grid=(B, n_hw),
            in_specs=[
                pl.BlockSpec((1, Cin, tile), lambda b, j: (b, 0, j)),   # input pixels
                pl.BlockSpec((Chid, Cin), lambda b, j: (0, 0)),         # W1^T
                pl.BlockSpec((Chid, 1), lambda b, j: (0, 0)),           # b1
                pl.BlockSpec((Cout, Chid), lambda b, j: (0, 0)),        # W2^T
                pl.BlockSpec((Cout, 1), lambda b, j: (0, 0)),           # b2
                pl.BlockSpec((1, Cout, tile), lambda b, j: (b, 0, j)),  # target heatmap
            ],
            out_specs=[
                pl.BlockSpec((1, Cout, tile), lambda b, j: (b, 0, j)),      # hm logits
                pl.BlockSpec((1, 1, 1, 1), lambda b, j: (b, j, 0, 0)),      # loss partials
            ],
        ),
        compiler_params=pltpu.CompilerParams(
            dimension_semantics=("parallel", "parallel"),
            vmem_limit_bytes=32 * 1024 * 1024,
        ),
    )(x3, w1t, b1c, w2t, b2c, t3)

    hm_nchw = hm3.reshape(B, Cout, H, W)                     # free reshape, already NCHW
    loss = jnp.sum(ploss) / jnp.float32(B * Cout * HW)       # mean over all heatmap elements
    return hm_nchw, loss


def model_with_loss_forward(epoch, batch, params, tile_hw=2048):
    """Mirrors ModleWithLoss.forward(epoch, batch) -> (outputs[-1], loss, loss_stats)."""
    del epoch  # TODO(synk): epoch only feeds the injected loss; synthetic MSE loss ignores it.
    w1, b1, w2, b2 = params
    hm, loss = _forward_pallas(batch["input"], batch["hm"], w1, b1, w2, b2,
                               tile_hw=tile_hw)
    loss_stats = {"loss": loss}
    return hm, loss, loss_stats


if __name__ == "__main__":
    # Small shapes consistent with the forward: batch=2, channels=4, spatial=16.
    B, Cin, H, W = 2, 4, 16, 16
    Chid, Cout = 32, 8

    key = jax.random.PRNGKey(0)
    k_x, k_t, k_w1, k_b1, k_w2, k_b2 = jax.random.split(key, 6)

    batch = {
        "input": jax.random.normal(k_x, (B, Cin, H, W), jnp.float32),
        "hm": jax.nn.sigmoid(jax.random.normal(k_t, (B, Cout, H, W), jnp.float32)),
    }

    # Deterministic synthetic model parameters (1x1 conv weights as matrices).
    w1 = jax.random.normal(k_w1, (Cin, Chid), jnp.float32) * 0.1
    b1 = jax.random.normal(k_b1, (1, Chid), jnp.float32) * 0.01
    w2 = jax.random.normal(k_w2, (Chid, Cout), jnp.float32) * 0.1
    b2 = jax.random.normal(k_b2, (1, Cout), jnp.float32) * 0.01

    hm_out, loss, loss_stats = model_with_loss_forward(0, batch, (w1, b1, w2, b2))
    jax.block_until_ready((hm_out, loss))

    # Reference check in plain JAX (independent NHWC path).
    x_rows = jnp.transpose(batch["input"], (0, 2, 3, 1)).reshape(-1, Cin)
    t_rows = jnp.transpose(batch["hm"], (0, 2, 3, 1)).reshape(-1, Cout)
    ref_logits = jnp.maximum(x_rows @ w1 + b1, 0.0) @ w2 + b2
    ref_hm = jnp.transpose(ref_logits.reshape(B, H, W, Cout), (0, 3, 1, 2))
    ref_loss = jnp.mean((jax.nn.sigmoid(ref_logits) - t_rows) ** 2)

    assert jnp.allclose(hm_out, ref_hm, atol=1e-5, rtol=1e-5)
    assert jnp.allclose(loss, ref_loss, atol=1e-6, rtol=1e-5)
    assert jnp.allclose(loss_stats["loss"], ref_loss, atol=1e-6, rtol=1e-5)

    print("KERNEL_OK")
</pallas_src>

<mosaic_0001>
module attributes {stable_mosaic.version = 11 : i64} {
  func.func @_model_with_loss_kernel(%arg0: i32, %arg1: i32, %arg2: memref<1x4x256xf32, #tpu.memory_space<vmem>>, %arg3: memref<32x4xf32, #tpu.memory_space<vmem>>, %arg4: memref<32x1xf32, #tpu.memory_space<vmem>>, %arg5: memref<8x32xf32, #tpu.memory_space<vmem>>, %arg6: memref<8x1xf32, #tpu.memory_space<vmem>>, %arg7: memref<1x8x256xf32, #tpu.memory_space<vmem>>, %arg8: memref<1x8x256xf32, #tpu.memory_space<vmem>>, %arg9: memref<1x1x1x1xf32, #tpu.memory_space<vmem>>) attributes {dimension_semantics = [#tpu.dimension_semantics<parallel>, #tpu.dimension_semantics<parallel>], iteration_bounds = array<i64: 2, 1>, scalar_prefetch = 0 : i64, scratch_operands = 0 : i64, tpu.core_type = #tpu.core_type<tc>, window_params = [{transform_indices = @transform_0, window_bounds = array<i64: 1, 4, 256>}, {pipeline_mode = #tpu.pipeline_mode<synchronous>, transform_indices = @transform_1, window_bounds = array<i64: 32, 4>}, {pipeline_mode = #tpu.pipeline_mode<synchronous>, transform_indices = @transform_2, window_bounds = array<i64: 32, 1>}, {pipeline_mode = #tpu.pipeline_mode<synchronous>, transform_indices = @transform_3, window_bounds = array<i64: 8, 32>}, {pipeline_mode = #tpu.pipeline_mode<synchronous>, transform_indices = @transform_4, window_bounds = array<i64: 8, 1>}, {transform_indices = @transform_5, window_bounds = array<i64: 1, 8, 256>}, {transform_indices = @transform_6, window_bounds = array<i64: 1, 8, 256>}, {transform_indices = @transform_7, window_bounds = array<i64: 1, 1, 1, 1>}]} {
    %c0 = arith.constant 0 : index
    %c0_0 = arith.constant 0 : index
    %c0_1 = arith.constant 0 : index
    %0 = vector.load %arg2[%c0, %c0_0, %c0_1] : memref<1x4x256xf32, #tpu.memory_space<vmem>>, vector<1x4x256xf32>
    %1 = vector.shape_cast %0 : vector<1x4x256xf32> to vector<4x256xf32>
    %c0_2 = arith.constant 0 : index
    %c0_3 = arith.constant 0 : index
    %2 = vector.load %arg3[%c0_2, %c0_3] : memref<32x4xf32, #tpu.memory_space<vmem>>, vector<32x4xf32>
    %c0_4 = arith.constant 0 : index
    %c0_5 = arith.constant 0 : index
    %3 = vector.load %arg4[%c0_4, %c0_5] : memref<32x1xf32, #tpu.memory_space<vmem>>, vector<32x1xf32>
    %4 = vector.extract_strided_slice %2 {offsets = [0, 0], sizes = [32, 1], strides = [1, 1]} : vector<32x4xf32> to vector<32x1xf32>
    %5 = vector.extract_strided_slice %1 {offsets = [0, 0], sizes = [1, 256], strides = [1, 1]} : vector<4x256xf32> to vector<1x256xf32>
    %6 = vector.broadcast %4 : vector<32x1xf32> to vector<32x256xf32>
    %7 = vector.broadcast %5 : vector<1x256xf32> to vector<32x256xf32>
    %8 = arith.mulf %6, %7 : vector<32x256xf32>
    %9 = vector.broadcast %3 : vector<32x1xf32> to vector<32x256xf32>
    %10 = arith.addf %9, %8 : vector<32x256xf32>
    %11 = vector.extract_strided_slice %2 {offsets = [0, 1], sizes = [32, 1], strides = [1, 1]} : vector<32x4xf32> to vector<32x1xf32>
    %12 = vector.extract_strided_slice %1 {offsets = [1, 0], sizes = [1, 256], strides = [1, 1]} : vector<4x256xf32> to vector<1x256xf32>
    %13 = vector.broadcast %11 : vector<32x1xf32> to vector<32x256xf32>
    %14 = vector.broadcast %12 : vector<1x256xf32> to vector<32x256xf32>
    %15 = arith.mulf %13, %14 : vector<32x256xf32>
    %16 = arith.addf %10, %15 : vector<32x256xf32>
    %17 = vector.extract_strided_slice %2 {offsets = [0, 2], sizes = [32, 1], strides = [1, 1]} : vector<32x4xf32> to vector<32x1xf32>
    %18 = vector.extract_strided_slice %1 {offsets = [2, 0], sizes = [1, 256], strides = [1, 1]} : vector<4x256xf32> to vector<1x256xf32>
    %19 = vector.broadcast %17 : vector<32x1xf32> to vector<32x256xf32>
    %20 = vector.broadcast %18 : vector<1x256xf32> to vector<32x256xf32>
    %21 = arith.mulf %19, %20 : vector<32x256xf32>
    %22 = arith.addf %16, %21 : vector<32x256xf32>
    %23 = vector.extract_strided_slice %2 {offsets = [0, 3], sizes = [32, 1], strides = [1, 1]} : vector<32x4xf32> to vector<32x1xf32>
    %24 = vector.extract_strided_slice %1 {offsets = [3, 0], sizes = [1, 256], strides = [1, 1]} : vector<4x256xf32> to vector<1x256xf32>
    %25 = vector.broadcast %23 : vector<32x1xf32> to vector<32x256xf32>
    %26 = vector.broadcast %24 : vector<1x256xf32> to vector<32x256xf32>
    %27 = arith.mulf %25, %26 : vector<32x256xf32>
    %28 = arith.addf %22, %27 : vector<32x256xf32>
    %cst = arith.constant 0.000000e+00 : f32
    %29 = vector.broadcast %cst : f32 to vector<32x256xf32>
    %30 = arith.maximumf %28, %29 : vector<32x256xf32>
    %c0_6 = arith.constant 0 : index
    %c0_7 = arith.constant 0 : index
    %31 = vector.load %arg5[%c0_6, %c0_7] : memref<8x32xf32, #tpu.memory_space<vmem>>, vector<8x32xf32>
    %cst_8 = arith.constant dense<0.000000e+00> : vector<8x256xf32>
    %32 = tpu.matmul %31, %30, %cst_8 {dimension_numbers = #tpu.dot_dimension_numbers<[1], [0], [0], [1], [0, 0, 1, 1], [], []>} : vector<8x32xf32>, vector<32x256xf32>, vector<8x256xf32> -> vector<8x256xf32>
    %c0_9 = arith.constant 0 : index
    %c0_10 = arith.constant 0 : index
    %33 = vector.load %arg6[%c0_9, %c0_10] : memref<8x1xf32, #tpu.memory_space<vmem>>, vector<8x1xf32>
    %34 = vector.broadcast %33 : vector<8x1xf32> to vector<8x256xf32>
    %35 = arith.addf %32, %34 : vector<8x256xf32>
    %c0_11 = arith.constant 0 : index
    %c0_12 = arith.constant 0 : index
    %c0_13 = arith.constant 0 : index
    %36 = vector.load %arg8[%c0_11, %c0_12, %c0_13] : memref<1x8x256xf32, #tpu.memory_space<vmem>>, vector<1x8x256xf32>
    %37 = vector.shape_cast %36 : vector<1x8x256xf32> to vector<8x256xf32>
    %38 = vector.shape_cast %35 : vector<8x256xf32> to vector<1x8x256xf32>
    tpu.vector_store %arg8[%c0_11, %c0_12, %c0_13], %38 {strides = array<i32>} : memref<1x8x256xf32, #tpu.memory_space<vmem>>, vector<1x8x256xf32>,
    %39 = arith.negf %35 : vector<8x256xf32>
    %40 = math.exp %39 : vector<8x256xf32>
    %cst_14 = arith.constant 1.000000e+00 : f32
    %41 = vector.broadcast %cst_14 : f32 to vector<8x256xf32>
    %42 = arith.addf %41, %40 : vector<8x256xf32>
    %43 = arith.divf %41, %42 : vector<8x256xf32>
    %c0_15 = arith.constant 0 : index
    %c0_16 = arith.constant 0 : index
    %c0_17 = arith.constant 0 : index
    %44 = vector.load %arg7[%c0_15, %c0_16, %c0_17] : memref<1x8x256xf32, #tpu.memory_space<vmem>>, vector<1x8x256xf32>
    %45 = vector.shape_cast %44 : vector<1x8x256xf32> to vector<8x256xf32>
    %46 = arith.subf %43, %45 : vector<8x256xf32>
    %47 = arith.mulf %46, %46 : vector<8x256xf32>
    %48 = vector.shape_cast %47 : vector<8x256xf32> to vector<1x8x256xf32>
    %cst_18 = arith.constant dense<0.000000e+00> : vector<1xf32>
    %49 = vector.multi_reduction <add>, %48, %cst_18 [1, 2] : vector<1x8x256xf32> to vector<1xf32>
    %50 = vector.shape_cast %49 : vector<1xf32> to vector<1x1x1xf32>
    %51 = vector.extract %50[0, 0, 0] : f32 from vector<1x1x1xf32>
    %52 = vector.broadcast %51 : f32 to vector<1x1xf32>
    %c0_19 = arith.constant 0 : index
    %c0_20 = arith.constant 0 : index
    %c0_21 = arith.constant 0 : index
    %c0_22 = arith.constant 0 : index
    %53 = vector.load %arg9[%c0_19, %c0_20, %c0_21, %c0_22] : memref<1x1x1x1xf32, #tpu.memory_space<vmem>>, vector<1x1x1x1xf32>
    %54 = vector.shape_cast %53 : vector<1x1x1x1xf32> to vector<1x1xf32>
    %55 = vector.shape_cast %52 : vector<1x1xf32> to vector<1x1x1x1xf32>
    tpu.vector_store %arg9[%c0_19, %c0_20, %c0_21, %c0_22], %55 {strides = array<i32>} : memref<1x1x1x1xf32, #tpu.memory_space<vmem>>, vector<1x1x1x1xf32>,
    return
  }
  func.func @transform_0(%arg0: i32, %arg1: i32) -> (i32, i32, i32) {
    %c0_i32 = arith.constant 0 : i32
    %c0_i32_0 = arith.constant 0 : i32
    return %arg0, %c0_i32, %arg1 : i32, i32, i32
  }
  func.func @transform_1(%arg0: i32, %arg1: i32) -> (i32, i32) {
    %c0_i32 = arith.constant 0 : i32
    %c0_i32_0 = arith.constant 0 : i32
    %c0_i32_1 = arith.constant 0 : i32
    return %c0_i32, %c0_i32_0 : i32, i32
  }
  func.func @transform_2(%arg0: i32, %arg1: i32) -> (i32, i32) {
    %c0_i32 = arith.constant 0 : i32
    %c0_i32_0 = arith.constant 0 : i32
    %c0_i32_1 = arith.constant 0 : i32
    return %c0_i32, %c0_i32_0 : i32, i32
  }
  func.func @transform_3(%arg0: i32, %arg1: i32) -> (i32, i32) {
    %c0_i32 = arith.constant 0 : i32
    %c0_i32_0 = arith.constant 0 : i32
    %c0_i32_1 = arith.constant 0 : i32
    return %c0_i32, %c0_i32_0 : i32, i32
  }
  func.func @transform_4(%arg0: i32, %arg1: i32) -> (i32, i32) {
    %c0_i32 = arith.constant 0 : i32
    %c0_i32_0 = arith.constant 0 : i32
    %c0_i32_1 = arith.constant 0 : i32
    return %c0_i32, %c0_i32_0 : i32, i32
  }
  func.func @transform_5(%arg0: i32, %arg1: i32) -> (i32, i32, i32) {
    %c0_i32 = arith.constant 0 : i32
    %c0_i32_0 = arith.constant 0 : i32
    return %arg0, %c0_i32, %arg1 : i32, i32, i32
  }
  func.func @transform_6(%arg0: i32, %arg1: i32) -> (i32, i32, i32) {
    %c0_i32 = arith.constant 0 : i32
    %c0_i32_0 = arith.constant 0 : i32
    return %arg0, %c0_i32, %arg1 : i32, i32, i32
  }
  func.func @transform_7(%arg0: i32, %arg1: i32) -> (i32, i32, i32, i32) {
    %c0_i32 = arith.constant 0 : i32
    %c0_i32_0 = arith.constant 0 : i32
    %c0_i32_1 = arith.constant 0 : i32
    return %arg0, %arg1, %c0_i32, %c0_i32_0 : i32, i32, i32, i32
  }
}

</mosaic_0001>

<bundles_post_ra>
// kernel: _forward_pallas.1
= control target key start
LH: loop header
LB: loop body
LE: loop exit
PB: predicated region body
PF: predicated region fallthrough
CT: control target
= control target key end

     0   :  { %s1016_s24 = smov 0   ;;  %s1018_s25 = smov 0   ;;  %s1158_s0 = inlined_call_operand.vmem [shape: f32[2,4,256], index: 0, kind: input, shape index: {}]   ;;  %s1159_s1 = inlined_call_operand.vmem [shape: f32[32,4], index: 1, kind: input, shape index: {}]   ;;  %s1160_s2 = inlined_call_operand.vmem [shape: f32[32,1], index: 2, kind: input, shape index: {}]   ;;  %s1161_s3 = inlined_call_operand.vmem [shape: f32[8,32], index: 3, kind: input, shape index: {}]   ;;  %s1162_s4 = inlined_call_operand.vmem [shape: f32[8,1], index: 4, kind: input, shape index: {}]   ;;  %s1163_s5 = inlined_call_operand.vmem [shape: f32[2,8,256], index: 5, kind: input, shape index: {}]   ;;  %s1164_s6 = inlined_call_operand.vmem [shape: f32[2,8,256], index: 6, kind: output, shape index: {0}]   ;;  %s1165_s7 = inlined_call_operand.vmem [shape: f32[2,1,1,1], index: 7, kind: output, shape index: {1}]  }
   0x1   :  { %s1020_s26 = smov 0  }
   0x2 LB: > { %s30_s27 = sadd.s32 1, %s965_s25  ;;  %p872_p0 = scmp.ge.s32.totalorder %s969_s26, 1  ;;  %s969_s26 = sphi %s1020_s26, %s18_s26   ;;  %s965_s25 = sphi %s1018_s25, %s1167_s25   ;;  %s961_s24 = sphi %s1016_s24, %s1166_s24  }
   0x3   : > { %p32_p1 = scmp.ge.s32.totalorder %s30_s27, 2  ;;  %p280_p2 = scmp.lt.s32.totalorder %s969_s26, 3 }
   0x5   : > { %s1169_s27 = smov (%p32_p1, %s30_s27), 0  ;;  %p281_p3 = pnand %p872_p0, %p280_p2 }
   0x6   : > { %v376_v0 = vld [vmem:[%s1160_s2] sm:$0xff] (!%p281_p3)  ;;  %v971_v2 = vmov (!%p281_p3), 0   ;;  %v377_v3 = vld [vmem:[%s1160_s2 + $0x8] sm:$0xff] (!%p281_p3)  ;;  %v375_v5 = vld [vmem:[%s1159_s1 + $0x18] sm:$0xff] (!%p281_p3)  ;;  %v972_v6 = vmov (!%p281_p3), 1   ;;  %v973_v9 = vmov (!%p281_p3), 2   ;;  %v401_v18 = vlaneseq (!%p281_p3) }
   0x7   : > { %284 = sbr.rel (%p281_p3) target bundleno = 653 (0x28d), region = 44  ;;  %v372_v1 = vld [vmem:[%s1159_s1] sm:$0xff] (!%p281_p3)  ;;  %927 = vset.pattern.permute.xlu1 (!%p281_p3), %v971_v2  ;;  %926 = vset.pattern.permute.xlu0 (!%p281_p3), %v971_v2  ;;  %v373_v4 = vld [vmem:[%s1159_s1 + $0x8] sm:$0xff] (!%p281_p3)  ;;  %v378_v7 = vld [vmem:[%s1160_s2 + $0x10] sm:$0xff] (!%p281_p3)  ;;  %v974_v10 = vmov (!%p281_p3), 3   ;;  %v975_v12 = vmov (!%p281_p3), 0.0  }
   0x8   : > { %429 = vperm.xlu1 (!%p281_p3), %927, %v376_v0   ;;  %382 = vperm.xlu0 (!%p281_p3), %926, %v372_v1   ;;  %v374_v8 = vld [vmem:[%s1159_s1 + $0x10] sm:$0xff] (!%p281_p3)  ;;  %v379_v11 = vld [vmem:[%s1160_s2 + $0x18] sm:$0xff] (!%p281_p3)  ;;  %v614_v13 = vld [vmem:[%s1162_s4] sm:$0xff] (!%p281_p3)  ;;  %p336_p4 = scmp.lt.s32.totalorder (!%p281_p3), %s961_s24, 1  ;;  %v402_v21 = vshrl.u32 (!%p281_p3), %v401_v18, 7  ;;  %vm620_vm0 = vcmask (!%p281_p3), 261120  }
   0x9   : > { %688 = vmatprep.mubr.f32.mxu0 (!%p281_p3), %v975_v12  ;;  %vm726_vm1 = vcmask (!%p281_p3), 0  }
   0xa   : > { %v403_v24 = vsub.s32 (!%p281_p3), 0, %v402_v21  ;;  %v407_v25 = vsub.s32 (!%p281_p3), 4, %v402_v21  ;;  %v473_v27 = vsub.s32 (!%p281_p3), 1, %v402_v21  ;;  %v477_v28 = vsub.s32 (!%p281_p3), 5, %v402_v21 }
   0xb   : > { %v523_v35 = vsub.s32 (!%p281_p3), 2, %v402_v21  ;;  %v527_v36 = vsub.s32 (!%p281_p3), 6, %v402_v21  ;;  %v573_v37 = vsub.s32 (!%p281_p3), 3, %v402_v21  ;;  %v577_v38 = vsub.s32 (!%p281_p3), 7, %v402_v21 }
   0xc   : > { %434 = vperm.xlu1 (!%p281_p3), %927, %v377_v3   ;;  %387 = vperm.xlu0 (!%p281_p3), %926, %v373_v4  }
   0xe   : > { %s1171_s24 = smov (!%p336_p4, %s961_s24), 1 }
   0xf   : > { %s884_s23 = sshll.u32 %s1171_s24, 3  ;;  %s885_s10 = sshll.u32 %s1171_s24, 4 }
  0x10   : > { %928 = vset.pattern.permute.xlu1 %v972_v6  ;;  %397 = vperm.xlu0 %926, %v375_v5   ;;  %s343_s30 = scalar_lea.vmem %s1158_s0, %s884_s23  ;;  %s363_s13 = scalar_lea.vmem %s1164_s6, %s885_s10 }
  0x11   : > { %460 = vperm.xlu1 %928, %v373_v4   ;;  %v371_v26 = vld [vmem:[%s343_s30] sm:$0xff]  ;;  %s353_s16 = scalar_lea.vmem %s1163_s5, %s885_s10  ;;  %s370_s19 = scalar_lea.vmem %s1165_s7, %s1171_s24 }
  0x12   : > { %v404_v30 = vrot.slane %v371_v26, %v403_v24  ;;  %v408_v31 = vrot.slane %v371_v26, %v407_v25  ;;  %v474_v33 = vrot.slane %v371_v26, %v473_v27  ;;  %v478_v34 = vrot.slane %v371_v26, %v477_v28 }
  0x13   : > { %v524_v44 = vrot.slane %v371_v26, %v523_v35  ;;  %v528_v45 = vrot.slane %v371_v26, %v527_v36  ;;  %v574_v47 = vrot.slane %v371_v26, %v573_v37  ;;  %v578_v48 = vrot.slane %v371_v26, %v577_v38 }
  0x14   : > { %439 = vperm.xlu0 %926, %v378_v7   ;;  %v1077_v40 = vrot.slane %v404_v30, %v403_v24  ;;  %v1079_v41 = vrot.slane %v408_v31, %v403_v24  ;;  %v1081_v42 = vrot.slane %v474_v33, %v473_v27  ;;  %v1083_v43 = vrot.slane %v478_v34, %v473_v27 }
  0x15   : > { %929 = vset.pattern.permute.xlu1 %v971_v2  ;;  %v1093_v56 = vrot.slane %v524_v44, %v523_v35  ;;  %v1095_v57 = vrot.slane %v528_v45, %v523_v35  ;;  %v1099_v60 = vrot.slane %v574_v47, %v573_v37  ;;  %v1101_v61 = vrot.slane %v578_v48, %v573_v37 }
  0x16   : > { %392 = vperm.xlu1 %929, %v374_v8  }
  0x18   : > { %931 = vset.pattern.permute.xlu0 %v972_v6 }
  0x19   : > { %456 = vperm.xlu0 %931, %v372_v1  }
  0x1a   : > { %930 = vset.pattern.permute.xlu1 %v973_v9 }
  0x1b   : > { %506 = vperm.xlu1 %930, %v372_v1  }
  0x1d   : > { %464 = vperm.xlu0 %931, %v374_v8  }
  0x1f   : > { %510 = vperm.xlu1 %930, %v373_v4  }
  0x21   : > { %935 = vset.pattern.permute.xlu0 %v974_v10 }
  0x22   : > { %560 = vperm.xlu0 %935, %v373_v4  }
  0x23   : > { %932 = vset.pattern.permute.xlu1 %v971_v2 }
  0x24   : > { %444 = vperm.xlu1 %932, %v379_v11  }
  0x26   : > { %564 = vperm.xlu0 %935, %v374_v8  }
  0x28   : > { %933 = vset.pattern.permute.xlu1 %v972_v6 }
  0x29   : > { %468 = vperm.xlu1 %933, %v375_v5  }
  0x2a   : > { %938 = vset.pattern.permute.xlu0 %v971_v2 }
  0x2b   : > { %617 = vperm.xlu0 %938, %v614_v13  }
  0x2d   : > { %934 = vset.pattern.permute.xlu1 %v974_v10 }
  0x2e   : > { %556 = vperm.xlu1 %934, %v372_v1  }
  0x32   : > { %936 = vset.pattern.permute.xlu1 %v973_v9 }
  0x33   : > { %514 = vperm.xlu1 %936, %v374_v8  }
  0x37   : > { %518 = vperm.xlu1 %936, %v375_v5  }
  0x3b   : > { %937 = vset.pattern.permute.xlu1 %v974_v10 }
  0x3c   : > { %568 = vperm.xlu1 %937, %v375_v5  }
  0x87   : > { %v430_v14 = vpop.permute.xlu1 %429  ;;  %v383_v15 = vpop.permute.xlu0 %382 }
  0x88   : > { %v419_v51 = vmul.f32 %v1077_v40, %v383_v15  ;;  %v420_v52 = vmul.f32 %v1079_v41, %v383_v15 }
  0x8a   : > { %v447_v2 = vadd.f32 %v430_v14, %v419_v51  ;;  %v448_v3 = vadd.f32 %v430_v14, %v420_v52 }
  0x8b   : > { %v435_v16 = vpop.permute.xlu1 %434  ;;  %v388_v17 = vpop.permute.xlu0 %387 }
  0x8c   : > { %v421_v49 = vmul.f32 %v1077_v40, %v388_v17  ;;  %v422_v50 = vmul.f32 %v1079_v41, %v388_v17 }
  0x8e   : > { %v449_v62 = vadd.f32 %v435_v16, %v421_v49  ;;  %v450_v63 = vadd.f32 %v435_v16, %v422_v50 }
  0x8f   : > { %v1067_v19 = vpop.permute.xlu0 %397 }
  0x90   : > { %v461_v20 = vpop.permute.xlu1 %460  ;;  %v426_v50 = vmul.f32 %v1079_v41, %v1067_v19 }
  0x91   : > { %v491_v54 = vmul.f32 %v1081_v42, %v461_v20  ;;  %v492_v55 = vmul.f32 %v1083_v43, %v461_v20 }
  0x93   : > { %v1073_v22 = vpop.permute.xlu0 %439  ;;  %v499_v5 = vadd.f32 %v491_v54, %v449_v62  ;;  %v500_v6 = vadd.f32 %v492_v55, %v450_v63 }
  0x95   : > { %v1075_v23 = vpop.permute.xlu1 %392 }
  0x96   : > { %v423_v26 = vmul.f32 %v1077_v40, %v1075_v23  ;;  %v424_v27 = vmul.f32 %v1079_v41, %v1075_v23 }
  0x98   : > { %v457_v32 = vpop.permute.xlu0 %456  ;;  %v451_v37 = vadd.f32 %v1073_v22, %v423_v26  ;;  %v452_v38 = vadd.f32 %v1073_v22, %v424_v27 }
  0x99   : > { %v489_v58 = vmul.f32 %v1081_v42, %v457_v32  ;;  %v490_v59 = vmul.f32 %v1083_v43, %v457_v32 }
  0x9a   : > { %v507_v29 = vpop.permute.xlu1 %506 }
  0x9b   : > { %v497_v8 = vadd.f32 %v489_v58, %v447_v2  ;;  %v498_v9 = vadd.f32 %v490_v59, %v448_v3  ;;  %v539_v10 = vmul.f32 %v1093_v56, %v507_v29  ;;  %v540_v11 = vmul.f32 %v1095_v57, %v507_v29 }
  0x9c   : > { %v465_v46 = vpop.permute.xlu0 %464 }
  0x9d   : > { %v547_v17 = vadd.f32 %v539_v10, %v497_v8  ;;  %v548_v18 = vadd.f32 %v540_v11, %v498_v9  ;;  %v493_v30 = vmul.f32 %v1081_v42, %v465_v46  ;;  %v494_v31 = vmul.f32 %v1083_v43, %v465_v46  ;;  %v613_v11 = vld [vmem:[%s1161_s3] sm:$0xff] }
  0x9e   : > { %v511_v39 = vpop.permute.xlu1 %510  ;;  %v425_v46 = vmul.f32 %v1077_v40, %v1067_v19 }
  0x9f   : > { %v541_v0 = vmul.f32 %v1093_v56, %v511_v39  ;;  %v542_v1 = vmul.f32 %v1095_v57, %v511_v39  ;;  %v501_v48 = vadd.f32 %v493_v30, %v451_v37  ;;  %v502_v49 = vadd.f32 %v494_v31, %v452_v38 }
  0xa1   : > { %v561_v4 = vpop.permute.xlu0 %560  ;;  %v549_v12 = vadd.f32 %v541_v0, %v499_v5  ;;  %v550_v13 = vadd.f32 %v542_v1, %v500_v6 }
  0xa2   : > { %v591_v15 = vmul.f32 %v1099_v60, %v561_v4  ;;  %v592_v16 = vmul.f32 %v1101_v61, %v561_v4 }
  0xa3   : > { %v1089_v53 = vpop.permute.xlu1 %444 }
  0xa4   : > { %v599_v14 = vadd.f32 %v591_v15, %v549_v12  ;;  %v600_v25 = vadd.f32 %v592_v16, %v550_v13  ;;  %v453_v62 = vadd.f32 %v1089_v53, %v425_v46  ;;  %v454_v40 = vadd.f32 %v1089_v53, %v426_v50 }
  0xa5   : > { %v565_v23 = vpop.permute.xlu0 %564 }
  0xa6   : > { %v608_v34 = vmax.f32 %v600_v25, 0.0  ;;  %v607_v36 = vmax.f32 %v599_v14, 0.0  ;;  %v593_v58 = vmul.f32 %v1099_v60, %v565_v23  ;;  %v594_v59 = vmul.f32 %v1101_v61, %v565_v23  ;;  %v710_v25 = vld [vmem:[%s353_s16 + $0x8] sm:$0xff] }
  0xa8   : > { %v469_v7 = vpop.permute.xlu1 %468 }
  0xa9   : > { %v495_v51 = vmul.f32 %v1081_v42, %v469_v7  ;;  %v496_v52 = vmul.f32 %v1083_v43, %v469_v7 }
  0xab   : > { %v503_v41 = vadd.f32 %v495_v51, %v453_v62  ;;  %v504_v42 = vadd.f32 %v496_v52, %v454_v40 }
  0xad   : > { %v557_v20 = vpop.permute.xlu1 %556 }
  0xae   : > { %v589_v21 = vmul.f32 %v1099_v60, %v557_v20  ;;  %v590_v24 = vmul.f32 %v1101_v61, %v557_v20 }
  0xb0   : > { %v597_v28 = vadd.f32 %v589_v21, %v547_v17  ;;  %v598_v29 = vadd.f32 %v590_v24, %v548_v18  ;;  %v709_v24 = vld [vmem:[%s353_s16] sm:$0xff] }
  0xb2   : > { %v515_v32 = vpop.permute.xlu1 %514  ;;  %v606_v33 = vmax.f32 %v598_v29, 0.0  ;;  %v605_v35 = vmax.f32 %v597_v28, 0.0 }
  0xb3   : > { %v543_v39 = vmul.f32 %v1093_v56, %v515_v32  ;;  %v544_v44 = vmul.f32 %v1095_v57, %v515_v32 }
  0xb4   : > { %v887_v45 = vpack.c.bf16 %v608_v34, %v606_v33  ;;  %v889_v47 = vpack.c.bf16 %v607_v36, %v605_v35 }
  0xb5   : > { %v551_v54 = vadd.f32 %v543_v39, %v501_v48  ;;  %v552_v55 = vadd.f32 %v544_v44, %v502_v49 }
  0xb6   : > { %v519_v22 = vpop.permute.xlu1 %518  ;;  %888 = vmatprep.subr.bf16.mxu0 %v887_v45 }
  0xb7   : > { %890 = vmatpush1.bf16.msra.mxu0 %v889_v47  ;;  %v545_v63 = vmul.f32 %v1093_v56, %v519_v22  ;;  %v546_v19 = vmul.f32 %v1095_v57, %v519_v22  ;;  %v601_v43 = vadd.f32 %v593_v58, %v551_v54  ;;  %v602_v0 = vadd.f32 %v594_v59, %v552_v55 }
  0xb9   : > { %v553_v2 = vadd.f32 %v545_v63, %v503_v41  ;;  %v554_v3 = vadd.f32 %v546_v19, %v504_v42  ;;  %v609_v8 = vmax.f32 %v601_v43, 0.0  ;;  %v610_v53 = vmax.f32 %v602_v0, 0.0 }
  0xbb   : > { %v569_v1 = vpop.permute.xlu1 %568 }
  0xbc   : > { %v595_v4 = vmul.f32 %v1099_v60, %v569_v1  ;;  %v596_v5 = vmul.f32 %v1101_v61, %v569_v1  ;;  %v618_v60 = vpop.permute.xlu0 %617 }
  0xbe   : > { %v603_v6 = vadd.f32 %v595_v4, %v553_v2  ;;  %v604_v7 = vadd.f32 %v596_v5, %v554_v3 }
  0xc0   : > { %v611_v9 = vmax.f32 %v603_v6, 0.0  ;;  %v612_v56 = vmax.f32 %v604_v7, 0.0 }
  0xc2   : > { %v891_v10 = vpack.c.bf16 %v612_v56, %v610_v53  ;;  %v893_v57 = vpack.c.bf16 %v611_v9, %v609_v8 }
  0xc4   : > { %892 = vmatprep.subr.bf16.mxu0 %v891_v10 }
  0xc5   : > { %894 = vmatpush1.bf16.msra.mxu0 %v893_v57 }
  0xc8   : > { %879 = vmatmul.mubr.msk.f32.vlgmr.msra.gmra.mrb[0].mxu0 %vm620_vm0, %v613_v11 }
 0x19b   : > { %v690_v61 = vpop.f32.mrb[0].mxu0 }
 0x19c   : > { %v691_v12 = vadd.f32 %v690_v61, %v618_v60  ;;  %v692_v13 = vpop.f32.mrb[1].mxu0 }
 0x19d   : > { %v693_v15 = vadd.f32 %v692_v13, %v618_v60 }
 0x19e   : > { %695 = vst [vmem:[%s363_s13] sm:$0xff] %v691_v12  ;;  %v880_v16 = vmul.f32 -1.442695, %v691_v12 }
 0x19f   : > { %696 = vst [vmem:[%s363_s13 + $0x8] sm:$0xff] %v693_v15  ;;  %v881_v17 = vmul.f32 -1.442695, %v693_v15 }
 0x1a0   : > { %939 = vpow2.f32 %v880_v16 }
 0x1a1   : > { %941 = vpow2.f32 %v881_v17 }
 0x1aa   : > { %v940_v18 = vpop.eup %939 }
 0x1ab   : > { %v942_v20 = vpop.eup %941  ;;  %v703_v14 = vadd.f32 1.0, %v940_v18 }
 0x1ac   : > { %v704_v21 = vadd.f32 1.0, %v942_v20 }
 0x1ad   : > { %943 = vrcp.f32 %v703_v14 }
 0x1ae   : > { %945 = vrcp.f32 %v704_v21 }
 0x1b7   : > { %v944_v26 = vpop.eup %943 }
 0x1b8   : > { %v946_v27 = vpop.eup %945  ;;  %v711_v28 = vsub.f32 %v944_v26, %v709_v24 }
 0x1b9   : > { %v712_v29 = vsub.f32 %v946_v27, %v710_v25 }
 0x1ba   : > { %v713_v30 = vmul.f32 %v711_v28, %v711_v28 }
 0x1bb   : > { %v714_v31 = vmul.f32 %v712_v29, %v712_v29 }
 0x1bd   : > { %v715_v32 = vadd.f32 %v714_v31, %v713_v30 }
 0x1bf   : > { %716 = vadd.xlane.f32.xlu1 %v715_v32 }
 0x24c   : > { %v717_v33 = vpop.xlane.xlu1 %716 }
 0x24d   : > { %v718_v34 = vrot.slane %v717_v33, 4 }
 0x24f   : > { %v719_v35 = vadd.f32 %v718_v34, %v717_v33 }
 0x251   : > { %v720_v36 = vrot.slane %v719_v35, 2 }
 0x253   : > { %v721_v37 = vadd.f32 %v720_v36, %v719_v35 }
 0x255   : > { %v722_v38 = vrot.slane %v721_v37, 1 }
 0x257   : > { %v723_v39 = vadd.f32 %v722_v38, %v721_v37 }
 0x259   : > { %895 = vpush %v723_v39 }
 0x28a   : > { %s896_s20 = spop %895 }
 0x28b   : > { %v725_v44 = vstv %s896_s20 }
 0x28c   : > { %727 = vst.msk [vmem:[%s370_s19] sm:$0x1] %vm726_vm1, %v725_v44 }
 0x28d PF: > { %s18_s26 = sadd.s32 1, %s969_s26   ;;  %s1166_s24 = smov %s965_s25 }
 0x28e   : > { %p15_p5 = scmp.ge.s32.totalorder %s18_s26, 4   ;;  %s1167_s25 = smov %s1169_s27 }
 0x290   :  { %17 = sbr.rel (!%p15_p5) target bundleno = 2 (0x2), region = 89 }

</bundles_post_ra>
